<compile_context>
chip_gen: v6e
topology: v6e:2x2x1
jax: 0.10.0
libtpu: 0.0.40
codegen_flags: <defaults>
</compile_context>

<pallas_src>
import functools
import math

import jax
import jax.numpy as jnp
from jax import lax
from jax.experimental import pallas as pl
from jax.experimental.pallas import tpu as pltpu

_LANE = 128


def _round_up(v, m):
    return ((v + m - 1) // m) * m


def _tpu_defaults():
    """(preferred row tile, scoped VMEM limit), tuned per generation when queryable."""
    tm, vmem = 256, 64 * 1024 * 1024               # safe on v5e / v6e / v7x (64 MiB physical on v7x)
    try:
        cap = pltpu.get_tpu_info().vmem_capacity_bytes
        if cap >= 128 * 1024 * 1024:               # v5e / v6e: 128 MiB physical VMEM
            tm, vmem = 512, 100 * 1024 * 1024
    except Exception:
        pass
    return tm, vmem


def _const_spec(shape, index_map):
    """BlockSpec for a grid-invariant operand: request a single VMEM buffer (no double-buffering)."""
    try:
        return pl.BlockSpec(shape, index_map, pipeline_mode=pl.Buffered(1))
    except Exception:                              # older jax without pipeline_mode / Buffered
        return pl.BlockSpec(shape, index_map)


# ----------------------------- kernel bodies (shared math) -----------------------------

def _gate(x, w, a2, *, out_f):
    """gated[:, :out_f] = r_D * support ; gated[:, out_f] = r_D ; remaining pad lanes = 0."""
    support = jnp.dot(x, w, preferred_element_type=jnp.float32)       # (tm, P); pad cols stay 0
    logit = jnp.sum(support * a2, axis=-1, keepdims=True)             # (tm, 1)
    r_d = 1.0 / (1.0 + jnp.exp(-logit))                               # sigmoid (exact divide)
    lane = lax.broadcasted_iota(jnp.int32, support.shape, 1)
    return r_d * jnp.where(lane == out_f, 1.0, support)               # single select packs r_D


def _softplus(x):
    # PyTorch F.softplus (beta=1, threshold=20)
    safe = jnp.minimum(x, 20.0)
    return jnp.where(x > 20.0, x, jnp.log(1.0 + jnp.exp(safe)))


def _epilogue(res, a1, *, out_f, concat):
    """Normalize by the packed `adj @ r_D` column, then gated clamp (+ optional ELU)."""
    sumnorm = res[:, out_f:out_f + 1]              # static lane slice of the packed normalizer
    # Reference relies on self-loops; the epsilon only guards zero-padded / degree-0 rows.
    out = res / jnp.maximum(sumnorm, 1e-30)        # exact division
    l_d = _softplus(jnp.sum(out * a1, axis=-1, keepdims=True))
    out = jnp.maximum(out, 0.0) + l_d * jnp.minimum(out, 0.0)
    if concat:                                     # ELU(alpha=1)
        out = jnp.where(out > 0.0, out, jnp.exp(jnp.minimum(out, 0.0)) - 1.0)
    return out


def _gate_kernel(x_ref, w_ref, a2_ref, gated_ref, *, out_f):
    gated_ref[...] = _gate(x_ref[...], w_ref[...], a2_ref[...],
                           out_f=out_f).astype(gated_ref.dtype)


def _aggregate_kernel(adj_ref, gated_ref, a1_ref, out_ref, acc_ref, *,
                      out_f, concat, compute_dtype):
    k = pl.program_id(1)

    @pl.when(k == 0)
    def _():
        acc_ref[...] = jnp.zeros_like(acc_ref)

    # int8 (exact 0/1) adjacency tile is upcast to the MXU compute dtype right before the dot.
    adj = adj_ref[...].astype(compute_dtype)
    acc_ref[...] += jnp.dot(adj, gated_ref[...], preferred_element_type=jnp.float32)

    @pl.when(k == pl.num_programs(1) - 1)
    def _():
        out_ref[...] = _epilogue(acc_ref[...], a1_ref[...], out_f=out_f,
                                 concat=concat).astype(out_ref.dtype)


def _fused_kernel(x_ref, w_ref, a1_ref, a2_ref, adj_ref, out_ref, *,
                  out_f, concat, compute_dtype):
    # Note: on the bf16 path the gated matrix (not just adjacency) is quantized to bf16;
    # f32 accumulation keeps the error ~2^-9 relative.
    gated = _gate(x_ref[...], w_ref[...], a2_ref[...], out_f=out_f).astype(compute_dtype)
    adj = adj_ref[...].astype(compute_dtype)
    res = jnp.dot(adj, gated, preferred_element_type=jnp.float32)
    out_ref[...] = _epilogue(res, a1_ref[...], out_f=out_f,
                             concat=concat).astype(out_ref.dtype)


# ----------------------------------- wrapper -----------------------------------

def sp_graph_attention_layer(x, adj_dense, W, a1, a2, *, concat=True, bias=None,
                             adj_dtype=jnp.int8, fuse_max_n=1024, row_tile=None,
                             k_resident_max=16384, k_tile_max=8192,
                             vmem_limit_bytes=None, force_streaming=False):
    """Forward pass of SpGraphAttentionLayer.

    x: (N, in_f) float, adj_dense: (N, N) densified 0/1 adjacency, W: (in_f, out_f),
    a1/a2: (out_f, 1) (or (out_f,)), bias: optional (out_f,)/(out_f, 1).
    adj_dtype: HBM storage dtype for adjacency. int8 / bf16 are exact for 0/1 edges;
               pass jnp.float32 for a weighted adjacency or a full-precision check.
    """
    n, in_f = x.shape
    out_f = W.shape[1]
    # Lane-dense padded width: out_f feature lanes + 1 lane packing r_D, rounded up to 128.
    p = _LANE * pl.cdiv(out_f + 1, _LANE)

    tm_default, vmem_default = _tpu_defaults()
    tm_pref = row_tile if row_tile is not None else tm_default
    vmem_limit = vmem_limit_bytes if vmem_limit_bytes is not None else vmem_default

    # MXU compute dtype: bf16 with f32 accumulation, unless an f32 adjacency is requested.
    compute_dtype = jnp.float32 if adj_dtype == jnp.float32 else jnp.bfloat16
    out_store_dtype = compute_dtype                # bf16 output slab halves writeback on bf16 path

    w_pad = jnp.zeros((in_f, p), jnp.float32).at[:, :out_f].set(W.astype(jnp.float32))
    a1_pad = jnp.zeros((1, p), jnp.float32).at[:, :out_f].set(
        a1.astype(jnp.float32).reshape(1, out_f))
    a2_pad = jnp.zeros((1, p), jnp.float32).at[:, :out_f].set(
        a2.astype(jnp.float32).reshape(1, out_f))
    x = x.astype(jnp.float32)

    if n <= fuse_max_n and not force_streaming:
        # ---- small graphs: one fused kernel, no gated HBM round-trip, whole problem in VMEM ----
        n_pad = _round_up(n, _LANE)
        x_pad = jnp.zeros((n_pad, in_f), jnp.float32).at[:n].set(x)
        adj_pad = jnp.zeros((n_pad, n_pad), adj_dtype).at[:n, :n].set(
            adj_dense.astype(adj_dtype))
        out_pad = pl.pallas_call(
            functools.partial(_fused_kernel, out_f=out_f, concat=concat,
                              compute_dtype=compute_dtype),
            out_shape=jax.ShapeDtypeStruct((n_pad, p), out_store_dtype),
            compiler_params=pltpu.CompilerParams(vmem_limit_bytes=vmem_limit),
        )(x_pad, w_pad, a1_pad, a2_pad, adj_pad)
    else:
        # ---- large graphs: stage 1 (gate) + stage 2 (streamed adjacency aggregation) ----
        tm = max(32, min(tm_pref, _round_up(n, 32)))      # adjacency is int8-tiled: tm % 32 == 0
        base = math.lcm(tm, _LANE)
        n_pad = _round_up(n, base)
        if n_pad <= k_resident_max:
            num_k, tk = 1, n_pad                          # gated matrix + full adj row stripe resident
        else:
            num_k = pl.cdiv(n_pad, k_tile_max)            # K-tiled accumulation bounds VMEM (v7x 64 MiB)
            tk = _round_up(pl.cdiv(n_pad, num_k), base)
            n_pad = tk * num_k
        rows = n_pad // tm
        if rows > 1 and rows % 2 == 1 and tm % 64 == 0:   # keep the row grid even for v7x's 2 TCs
            tm //= 2
            rows = n_pad // tm

        x_pad = jnp.zeros((n_pad, in_f), jnp.float32).at[:n].set(x)
        adj_pad = jnp.zeros((n_pad, n_pad), adj_dtype).at[:n, :n].set(
            adj_dense.astype(adj_dtype))

        gated = pl.pallas_call(
            functools.partial(_gate_kernel, out_f=out_f),
            out_shape=jax.ShapeDtypeStruct((n_pad, p), compute_dtype),
            grid=(rows,),
            in_specs=[
                pl.BlockSpec((tm, in_f), lambda i: (i, 0)),
                _const_spec((in_f, p), lambda i: (0, 0)),
                _const_spec((1, p), lambda i: (0, 0)),
            ],
            out_specs=pl.BlockSpec((tm, p), lambda i: (i, 0)),
            compiler_params=pltpu.CompilerParams(
                dimension_semantics=("parallel",), vmem_limit_bytes=vmem_limit),
        )(x_pad, w_pad, a2_pad)

        gated_spec = (_const_spec((tk, p), lambda i, k: (0, 0)) if num_k == 1 else
                      pl.BlockSpec((tk, p), lambda i, k: (k, 0)))
        out_pad = pl.pallas_call(
            functools.partial(_aggregate_kernel, out_f=out_f, concat=concat,
                              compute_dtype=compute_dtype),
            out_shape=jax.ShapeDtypeStruct((n_pad, p), out_store_dtype),
            grid=(rows, num_k),
            in_specs=[
                pl.BlockSpec((tm, tk), lambda i, k: (i, k)),     # streamed int8 adjacency tile
                gated_spec,
                _const_spec((1, p), lambda i, k: (0, 0)),
            ],
            out_specs=pl.BlockSpec((tm, p), lambda i, k: (i, 0)),
            scratch_shapes=[pltpu.VMEM((tm, p), jnp.float32)],
            compiler_params=pltpu.CompilerParams(
                dimension_semantics=("parallel", "arbitrary"),
                vmem_limit_bytes=vmem_limit),
        )(adj_pad, gated, a1_pad)

    out = out_pad[:n, :out_f].astype(jnp.float32)
    if bias is not None:
        out = out + bias.astype(jnp.float32).reshape(1, out_f)
    return out


# ----------------------------------- reference & test -----------------------------------

def _xavier_uniform(key, shape, gain=1.0):
    fan_in, fan_out = shape[1], shape[0]          # PyTorch xavier_uniform_ convention for 2D
    bound = gain * jnp.sqrt(6.0 / (fan_in + fan_out))
    return jax.random.uniform(key, shape, jnp.float32, -bound, bound)


def _reference(x, adj, W, a1, a2, concat=True):
    mm = functools.partial(jnp.matmul, precision=lax.Precision.HIGHEST)
    support = mm(x, W)
    r_d = jax.nn.sigmoid(mm(support, a2))
    out = mm(adj, r_d * support) / mm(adj, r_d)
    l_d = jax.nn.softplus(mm(out, a1))
    out = jnp.maximum(out, 0.0) + l_d * jnp.minimum(out, 0.0)
    if concat:
        out = jax.nn.elu(out)
    return out


if __name__ == "__main__":
    N, IN_F, OUT_F = 64, 32, 32

    key = jax.random.PRNGKey(0)
    kx, ka, kw, k1, k2 = jax.random.split(key, 5)

    x = jax.random.normal(kx, (N, IN_F), jnp.float32)
    # Deterministic sparse-ish binary adjacency with self loops, stored dense.
    edge_mask = (jax.random.uniform(ka, (N, N)) > 0.8).astype(jnp.float32)
    adj_dense = jnp.minimum(edge_mask + jnp.eye(N, dtype=jnp.float32), 1.0)

    W = _xavier_uniform(kw, (IN_F, OUT_F))
    a1 = _xavier_uniform(k1, (OUT_F, 1))
    a2 = _xavier_uniform(k2, (OUT_F, 1))

    ref = _reference(x, adj_dense, W, a1, a2, concat=True)

    # 1) f32 path (fused small-N kernel) -- structural check.
    out_f32 = jax.block_until_ready(
        sp_graph_attention_layer(x, adj_dense, W, a1, a2, concat=True,
                                 adj_dtype=jnp.float32))
    assert out_f32.shape == (N, OUT_F)
    assert jnp.allclose(out_f32, ref, atol=1e-2, rtol=1e-2), "fused f32 kernel mismatch"

    # 2) production path: int8 adjacency in HBM, bf16 MXU compute (fused small-N kernel).
    out_prod = jax.block_until_ready(
        sp_graph_attention_layer(x, adj_dense, W, a1, a2, concat=True))
    assert out_prod.shape == (N, OUT_F)
    assert jnp.allclose(out_prod, ref, atol=5e-2, rtol=5e-2), "fused int8/bf16 kernel mismatch"

    # 3) large-graph streaming path (row-tiled + K-accumulated), forced at small N for coverage.
    out_stream = jax.block_until_ready(
        sp_graph_attention_layer(x, adj_dense, W, a1, a2, concat=True,
                                 force_streaming=True))
    assert out_stream.shape == (N, OUT_F)
    assert jnp.allclose(out_stream, ref, atol=5e-2, rtol=5e-2), "streaming kernel mismatch"

    # 4) concat=False branch.
    ref_nc = _reference(x, adj_dense, W, a1, a2, concat=False)
    out_nc = jax.block_until_ready(
        sp_graph_attention_layer(x, adj_dense, W, a1, a2, concat=False,
                                 adj_dtype=jnp.float32))
    assert jnp.allclose(out_nc, ref_nc, atol=1e-2, rtol=1e-2), "concat=False kernel mismatch"

    print("KERNEL_OK")
</pallas_src>

<mosaic_0001>
module attributes {stable_mosaic.version = 11 : i64} {
  func.func @_fused_kernel(%arg0: memref<128x32xf32, #tpu.memory_space<vmem>>, %arg1: memref<32x128xf32, #tpu.memory_space<vmem>>, %arg2: memref<1x128xf32, #tpu.memory_space<vmem>>, %arg3: memref<1x128xf32, #tpu.memory_space<vmem>>, %arg4: memref<128x128xf32, #tpu.memory_space<vmem>>, %arg5: memref<128x128xf32, #tpu.memory_space<vmem>>) attributes {dimension_semantics = [], scalar_prefetch = 0 : i64, scratch_operands = 0 : i64, tpu.core_type = #tpu.core_type<tc>} {
    %c0 = arith.constant 0 : index
    %c0_0 = arith.constant 0 : index
    %0 = vector.load %arg0[%c0, %c0_0] : memref<128x32xf32, #tpu.memory_space<vmem>>, vector<128x32xf32>
    %c0_1 = arith.constant 0 : index
    %c0_2 = arith.constant 0 : index
    %1 = vector.load %arg1[%c0_1, %c0_2] : memref<32x128xf32, #tpu.memory_space<vmem>>, vector<32x128xf32>
    %c0_3 = arith.constant 0 : index
    %c0_4 = arith.constant 0 : index
    %2 = vector.load %arg3[%c0_3, %c0_4] : memref<1x128xf32, #tpu.memory_space<vmem>>, vector<1x128xf32>
    %cst = arith.constant dense<0.000000e+00> : vector<128x128xf32>
    %3 = tpu.matmul %0, %1, %cst {dimension_numbers = #tpu.dot_dimension_numbers<[1], [0], [0], [1], [0, 0, 1, 1], [], []>} : vector<128x32xf32>, vector<32x128xf32>, vector<128x128xf32> -> vector<128x128xf32>
    %4 = vector.broadcast %2 : vector<1x128xf32> to vector<128x128xf32>
    %5 = arith.mulf %3, %4 : vector<128x128xf32>
    %cst_5 = arith.constant dense<0.000000e+00> : vector<128xf32>
    %6 = vector.multi_reduction <add>, %5, %cst_5 [1] : vector<128x128xf32> to vector<128xf32>
    %7 = vector.shape_cast %6 : vector<128xf32> to vector<128x1xf32>
    %cst_6 = arith.constant 0.000000e+00 : f32
    %8 = vector.broadcast %cst_6 : f32 to vector<128x1xf32>
    %9 = arith.subf %8, %7 : vector<128x1xf32>
    %10 = math.exp %9 : vector<128x1xf32>
    %cst_7 = arith.constant 1.000000e+00 : f32
    %11 = vector.broadcast %cst_7 : f32 to vector<128x1xf32>
    %12 = arith.addf %11, %10 : vector<128x1xf32>
    %cst_8 = arith.constant 1.000000e+00 : f32
    %13 = vector.broadcast %cst_8 : f32 to vector<128x1xf32>
    %14 = arith.divf %13, %12 : vector<128x1xf32>
    %15 = tpu.iota {dimensions = array<i32: 1>} : vector<128x128xi32>
    %c32_i32 = arith.constant 32 : i32
    %16 = vector.broadcast %c32_i32 : i32 to vector<128x128xi32>
    %17 = arith.cmpi eq, %15, %16 : vector<128x128xi32>
    %cst_9 = arith.constant 1.000000e+00 : f32
    %18 = vector.broadcast %cst_9 : f32 to vector<128x128xf32>
    %19 = arith.select %17, %18, %3 : vector<128x128xi1>, vector<128x128xf32>
    %20 = vector.broadcast %14 : vector<128x1xf32> to vector<128x128xf32>
    %21 = arith.mulf %20, %19 : vector<128x128xf32>
    %c0_10 = arith.constant 0 : index
    %c0_11 = arith.constant 0 : index
    %22 = vector.load %arg4[%c0_10, %c0_11] : memref<128x128xf32, #tpu.memory_space<vmem>>, vector<128x128xf32>
    %cst_12 = arith.constant dense<0.000000e+00> : vector<128x128xf32>
    %23 = tpu.matmul %22, %21, %cst_12 {dimension_numbers = #tpu.dot_dimension_numbers<[1], [0], [0], [1], [0, 0, 1, 1], [], []>} : vector<128x128xf32>, vector<128x128xf32>, vector<128x128xf32> -> vector<128x128xf32>
    %c0_13 = arith.constant 0 : index
    %c0_14 = arith.constant 0 : index
    %24 = vector.load %arg2[%c0_13, %c0_14] : memref<1x128xf32, #tpu.memory_space<vmem>>, vector<1x128xf32>
    %25 = vector.extract_strided_slice %23 {offsets = [0, 32], sizes = [128, 1], strides = [1, 1]} : vector<128x128xf32> to vector<128x1xf32>
    %cst_15 = arith.constant 1.000000e-30 : f32
    %26 = vector.broadcast %cst_15 : f32 to vector<128x1xf32>
    %27 = arith.maximumf %25, %26 : vector<128x1xf32>
    %28 = vector.broadcast %27 : vector<128x1xf32> to vector<128x128xf32>
    %29 = arith.divf %23, %28 : vector<128x128xf32>
    %30 = vector.broadcast %24 : vector<1x128xf32> to vector<128x128xf32>
    %31 = arith.mulf %29, %30 : vector<128x128xf32>
    %cst_16 = arith.constant dense<0.000000e+00> : vector<128xf32>
    %32 = vector.multi_reduction <add>, %31, %cst_16 [1] : vector<128x128xf32> to vector<128xf32>
    %33 = vector.shape_cast %32 : vector<128xf32> to vector<128x1xf32>
    %cst_17 = arith.constant 2.000000e+01 : f32
    %34 = vector.broadcast %cst_17 : f32 to vector<128x1xf32>
    %35 = arith.minimumf %33, %34 : vector<128x1xf32>
    %cst_18 = arith.constant 2.000000e+01 : f32
    %36 = vector.broadcast %cst_18 : f32 to vector<128x1xf32>
    %37 = arith.cmpf ogt, %33, %36 : vector<128x1xf32>
    %38 = math.exp %35 : vector<128x1xf32>
    %cst_19 = arith.constant 1.000000e+00 : f32
    %39 = vector.broadcast %cst_19 : f32 to vector<128x1xf32>
    %40 = arith.addf %39, %38 : vector<128x1xf32>
    %41 = math.log %40 : vector<128x1xf32>
    %42 = arith.select %37, %33, %41 : vector<128x1xi1>, vector<128x1xf32>
    %cst_20 = arith.constant 0.000000e+00 : f32
    %43 = vector.broadcast %cst_20 : f32 to vector<128x128xf32>
    %44 = arith.maximumf %29, %43 : vector<128x128xf32>
    %cst_21 = arith.constant 0.000000e+00 : f32
    %45 = vector.broadcast %cst_21 : f32 to vector<128x128xf32>
    %46 = arith.minimumf %29, %45 : vector<128x128xf32>
    %47 = vector.broadcast %42 : vector<128x1xf32> to vector<128x128xf32>
    %48 = arith.mulf %47, %46 : vector<128x128xf32>
    %49 = arith.addf %44, %48 : vector<128x128xf32>
    %cst_22 = arith.constant 0.000000e+00 : f32
    %50 = vector.broadcast %cst_22 : f32 to vector<128x128xf32>
    %51 = arith.cmpf ogt, %49, %50 : vector<128x128xf32>
    %cst_23 = arith.constant 0.000000e+00 : f32
    %52 = vector.broadcast %cst_23 : f32 to vector<128x128xf32>
    %53 = arith.minimumf %49, %52 : vector<128x128xf32>
    %54 = math.exp %53 : vector<128x128xf32>
    %cst_24 = arith.constant 1.000000e+00 : f32
    %55 = vector.broadcast %cst_24 : f32 to vector<128x128xf32>
    %56 = arith.subf %54, %55 : vector<128x128xf32>
    %57 = arith.select %51, %49, %56 : vector<128x128xi1>, vector<128x128xf32>
    %c0_25 = arith.constant 0 : index
    %c0_26 = arith.constant 0 : index
    %58 = vector.load %arg5[%c0_25, %c0_26] : memref<128x128xf32, #tpu.memory_space<vmem>>, vector<128x128xf32>
    tpu.vector_store %arg5[%c0_25, %c0_26], %57 {strides = array<i32>} : memref<128x128xf32, #tpu.memory_space<vmem>>, vector<128x128xf32>,
    return
  }
}

</mosaic_0001>

<bundles_post_ra>
// kernel: tpu_custom_call.1
= control target key start
LH: loop header
LB: loop body
LE: loop exit
PB: predicated region body
PF: predicated region fallthrough
CT: control target
= control target key end

     0   :  { %vm42_vm0 = vcmask 261120   ;;  %s2131_s0 = inlined_call_operand.vmem [shape: f32[128,32], index: 0, kind: input, shape index: {}]   ;;  %s2132_s1 = inlined_call_operand.vmem [shape: f32[32,128], index: 1, kind: input, shape index: {}]   ;;  %s2133_s2 = inlined_call_operand.vmem [shape: f32[1,128], index: 2, kind: input, shape index: {}]   ;;  %s2134_s3 = inlined_call_operand.vmem [shape: f32[1,128], index: 3, kind: input, shape index: {}]   ;;  %s2135_s4 = inlined_call_operand.vmem [shape: f32[128,128], index: 4, kind: input, shape index: {}]   ;;  %s2136_s5 = inlined_call_operand.hbm [shape: f32[128,128], index: 5, kind: output, shape index: {}]  }
   0x1   :  { %v40_v0 = vld [vmem:[%s2132_s1 + $0x18] sm:$0xff]  ;;  %v39_v1 = vld [vmem:[%s2132_s1 + $0x10] sm:$0xff]  ;;  %v21_v2 = vld [vmem:[%s2131_s0] sm:$0xff] }
   0x2   :  { %1171 = vmatprep.subr.mxu0 %v40_v0  ;;  %v38_v3 = vld [vmem:[%s2132_s1 + $0x8] sm:$0xff]  ;;  %1179 = vmatprep.mubr.msk.f32.mxu0 %vm42_vm0, %v21_v2  ;;  %v37_v4 = vld [vmem:[%s2132_s1] sm:$0xff] }
   0x3   :  { %1172 = vmatpush3.msra.mxu0 %v40_v0  ;;  %v22_v5 = vld [vmem:[%s2131_s0 + $0x8] sm:$0xff] }
   0x4   :  { %1173 = vmatprep.subr.mxu0 %v39_v1 }
   0x5   :  { %1174 = vmatpush3.msra.mxu0 %v39_v1 }
   0x6   :  { %1175 = vmatprep.subr.mxu0 %v38_v3 }
   0x7   :  { %1176 = vmatpush3.msra.mxu0 %v38_v3 }
   0x8   :  { %10 = vsyncpa [#allocation3], 0  ;;  %1177 = vmatprep.subr.mxu0 %v37_v4  ;;  %v23_v6 = vld [vmem:[%s2131_s0 + $0x10] sm:$0xff]  ;;  %v24_v7 = vld [vmem:[%s2131_s0 + $0x18] sm:$0xff] }
   0x9   :  { %1178 = vmatpush3.msra.mxu0 %v37_v4  ;;  %v25_v8 = vld [vmem:[%s2131_s0 + $0x20] sm:$0xff]  ;;  %v26_v9 = vld [vmem:[%s2131_s0 + $0x28] sm:$0xff]  ;;  %v27_v10 = vld [vmem:[%s2131_s0 + $0x30] sm:$0xff] }
   0xa   :  { %1180 = vmatmul.mubr.msk.f32.vlgmr.msra.gmra.mxu0 %vm42_vm0, %v22_v5  ;;  %v28_v11 = vld [vmem:[%s2131_s0 + $0x38] sm:$0xff]  ;;  %v29_v12 = vld [vmem:[%s2131_s0 + $0x40] sm:$0xff]  ;;  %v30_v13 = vld [vmem:[%s2131_s0 + $0x48] sm:$0xff] }
   0xb   :  { %1182 = vmatprep.mubr.msk.f32.mxu0 %vm42_vm0, %v23_v6  ;;  %v31_v14 = vld [vmem:[%s2131_s0 + $0x50] sm:$0xff]  ;;  %v32_v15 = vld [vmem:[%s2131_s0 + $0x58] sm:$0xff]  ;;  %v33_v16 = vld [vmem:[%s2131_s0 + $0x60] sm:$0xff] }
   0xc   :  { %v34_v17 = vld [vmem:[%s2131_s0 + $0x68] sm:$0xff]  ;;  %v35_v18 = vld [vmem:[%s2131_s0 + $0x70] sm:$0xff]  ;;  %v36_v19 = vld [vmem:[%s2131_s0 + $0x78] sm:$0xff] }
   0xd   :  { %v1101_v33 = vld [vmem:[%s2134_s3] ss:$0 sm:$0xff]  ;;  %v427_v54 = vld [vmem:[%s2135_s4 + $0x30] sm:$0xff] }
   0xe   :  { %1183 = vmatmul.mubr.msk.f32.gmra.mxu0 %vm42_vm0, %v24_v7  ;;  %v421_v53 = vld [vmem:[%s2135_s4] sm:$0xff]  ;;  %1244 = vmatprep.mubr.f32.mxu1 %v427_v54 }
   0xf   :  { %1185 = vmatprep.mubr.msk.f32.mxu0 %vm42_vm0, %v25_v8 }
  0x12   :  { %1186 = vmatmul.mubr.msk.f32.gmra.mxu0 %vm42_vm0, %v26_v9 }
  0x13   :  { %1188 = vmatprep.mubr.msk.f32.mxu0 %vm42_vm0, %v27_v10 }
  0x16   :  { %1189 = vmatmul.mubr.msk.f32.gmra.mxu0 %vm42_vm0, %v28_v11 }
  0x17   :  { %1191 = vmatprep.mubr.msk.f32.mxu0 %vm42_vm0, %v29_v12 }
  0x1a   :  { %1192 = vmatmul.mubr.msk.f32.gmra.mxu0 %vm42_vm0, %v30_v13 }
  0x1b   :  { %1194 = vmatprep.mubr.msk.f32.mxu0 %vm42_vm0, %v31_v14 }
  0x1e   :  { %1195 = vmatmul.mubr.msk.f32.gmra.mxu0 %vm42_vm0, %v32_v15 }
  0x1f   :  { %1197 = vmatprep.mubr.msk.f32.mxu0 %vm42_vm0, %v33_v16 }
  0x22   :  { %1198 = vmatmul.mubr.msk.f32.gmra.mxu0 %vm42_vm0, %v34_v17 }
  0x23   :  { %1200 = vmatprep.mubr.msk.f32.mxu0 %vm42_vm0, %v35_v18 }
  0x26   :  { %1201 = vmatmul.mubr.msk.f32.gmra.mxu0 %vm42_vm0, %v36_v19 }
  0x27   :  { %1235 = vmatprep.mubr.f32.mxu0 %v421_v53 }
  0xca   :  { %v1621_v20 = vpop.f32.mrf.mxu0 }
  0xcb   :  { %v243_v52 = vmul.f32 %v1621_v20, %v1101_v33 }
  0xcc   :  { %v1623_v21 = vpop.f32.mrf.mxu0 }
  0xcd   :  { %v242_v50 = vmul.f32 %v1101_v33, %v1623_v21 }
  0xce   :  { %v1625_v22 = vpop.f32.mrf.mxu0 }
  0xcf   :  { %v245_v51 = vmul.f32 %v1625_v22, %v1101_v33 }
  0xd0   :  { %v1627_v23 = vpop.f32.mrf.mxu0 }
  0xd1   :  { %v244_v48 = vmul.f32 %v1101_v33, %v1627_v23 }
  0xd2   :  { %v1629_v24 = vpop.f32.mrf.mxu0 }
  0xd3   :  { %v247_v49 = vmul.f32 %v1629_v24, %v1101_v33 }
  0xd4   :  { %v1631_v25 = vpop.f32.mrf.mxu0 }
  0xd5   :  { %v246_v46 = vmul.f32 %v1101_v33, %v1631_v25 }
  0xd6   :  { %v1633_v26 = vpop.f32.mrf.mxu0 }
  0xd7   :  { %v249_v47 = vmul.f32 %v1633_v26, %v1101_v33 }
  0xd8   :  { %v1635_v27 = vpop.f32.mrf.mxu0 }
  0xd9   :  { %v248_v44 = vmul.f32 %v1101_v33, %v1635_v27 }
  0xda   :  { %v1637_v28 = vpop.f32.mrf.mxu0 }
  0xdb   :  { %v251_v45 = vmul.f32 %v1637_v28, %v1101_v33 }
  0xdc   :  { %v1639_v29 = vpop.f32.mrf.mxu0 }
  0xdd   :  { %v250_v42 = vmul.f32 %v1101_v33, %v1639_v29 }
  0xde   :  { %v1641_v30 = vpop.f32.mrf.mxu0 }
  0xdf   :  { %v253_v43 = vmul.f32 %v1641_v30, %v1101_v33 }
  0xe0   :  { %v1643_v31 = vpop.f32.mrf.mxu0 }
  0xe1   :  { %v252_v40 = vmul.f32 %v1101_v33, %v1643_v31 }
  0xe2   :  { %v1645_v32 = vpop.f32.mrf.mxu0 }
  0xe3   :  { %v255_v34 = vmul.f32 %v1645_v32, %v1101_v33 }
  0xe4   :  { %v1651_v35 = vpop.f32.mrf.mxu0 }
  0xe5   :  { %284 = vadd.xlane.f32.xlu1 %v255_v34  ;;  %v254_v37 = vmul.f32 %v1101_v33, %v1651_v35 }
  0xe6   :  { %v1653_v36 = vpop.f32.mrf.mxu0 }
  0xe7   :  { %v257_v38 = vmul.f32 %v1653_v36, %v1101_v33 }
  0xe8   :  { %v1657_v39 = vpop.f32.mrf.mxu0 }
  0xe9   :  { %282 = vadd.xlane.f32.xlu1 %v254_v37  ;;  %288 = vadd.xlane.f32.xlu0 %v257_v38  ;;  %v256_v41 = vmul.f32 %v1101_v33, %v1657_v39 }
  0xed   :  { %278 = vadd.xlane.f32.xlu1 %v252_v40  ;;  %286 = vadd.xlane.f32.xlu0 %v256_v41 }
  0xf1   :  { %274 = vadd.xlane.f32.xlu1 %v250_v42  ;;  %280 = vadd.xlane.f32.xlu0 %v253_v43 }
  0xf5   :  { %270 = vadd.xlane.f32.xlu1 %v248_v44  ;;  %276 = vadd.xlane.f32.xlu0 %v251_v45 }
  0xf9   :  { %266 = vadd.xlane.f32.xlu1 %v246_v46  ;;  %272 = vadd.xlane.f32.xlu0 %v249_v47 }
  0xfd   :  { %262 = vadd.xlane.f32.xlu1 %v244_v48  ;;  %268 = vadd.xlane.f32.xlu0 %v247_v49 }
 0x101   :  { %258 = vadd.xlane.f32.xlu1 %v242_v50  ;;  %264 = vadd.xlane.f32.xlu0 %v245_v51 }
 0x105   :  { %260 = vadd.xlane.f32.xlu0 %v243_v52 }
 0x16e   :  { %v285_v55 = vpop.xlane.xlu1 %284 }
 0x16f   :  { %v303_v56 = vsub.f32 0.0, %v285_v55 }
 0x171   :  { %v332_v57 = vmul.f32 1.442695, %v303_v56 }
 0x172   :  { %v283_v58 = vpop.xlane.xlu1 %282  ;;  %v289_v59 = vpop.xlane.xlu0 %288 }
 0x173   :  { %1297 = vpow2.f32 %v332_v57  ;;  %v302_v60 = vsub.f32 0.0, %v283_v58  ;;  %v305_v61 = vsub.f32 0.0, %v289_v59 }
 0x175   :  { %v330_v62 = vmul.f32 1.442695, %v302_v60  ;;  %v336_v63 = vmul.f32 1.442695, %v305_v61  ;;  %v386_v60 = vlaneseq }
 0x176   :  { %v279_v0 = vpop.xlane.xlu1 %278  ;;  %v287_v1 = vpop.xlane.xlu0 %286 }
 0x177   :  { %1299 = vpow2.f32 %v330_v62  ;;  %v300_v2 = vsub.f32 0.0, %v279_v0  ;;  %v304_v3 = vsub.f32 0.0, %v287_v1 }
 0x178   :  { %1301 = vpow2.f32 %v336_v63 }
 0x179   :  { %v326_v4 = vmul.f32 1.442695, %v300_v2  ;;  %v334_v5 = vmul.f32 1.442695, %v304_v3 }
 0x17a   :  { %v275_v6 = vpop.xlane.xlu1 %274  ;;  %v281_v7 = vpop.xlane.xlu0 %280 }
 0x17b   :  { %1303 = vpow2.f32 %v326_v4  ;;  %v298_v8 = vsub.f32 0.0, %v275_v6  ;;  %v301_v9 = vsub.f32 0.0, %v281_v7  ;;  %v1678_v4 = vand.u32 127, %v386_v60 }
 0x17c   :  { %1305 = vpow2.f32 %v334_v5 }
 0x17d   :  { %v328_v10 = vmul.f32 1.442695, %v301_v9  ;;  %v322_v11 = vmul.f32 1.442695, %v298_v8  ;;  %vm388_vm1 = vcmp.eq.s32.totalorder %v1678_v4, 32  ;;  %v423_v4 = vld [vmem:[%s2135_s4 + $0x10] sm:$0xff] }
 0x17e   :  { %v271_v12 = vpop.xlane.xlu1 %270  ;;  %v277_v13 = vpop.xlane.xlu0 %276 }
 0x17f   :  { %v296_v14 = vsub.f32 0.0, %v271_v12  ;;  %v299_v15 = vsub.f32 0.0, %v277_v13  ;;  %1307 = vpow2.f32 %v328_v10  ;;  %v404_v12 = vsel %vm388_vm1, 1.0, %v1653_v36 }
 0x180   :  { %v1298_v16 = vpop.eup %1297  ;;  %1309 = vpow2.f32 %v322_v11 }
 0x181   :  { %v318_v17 = vmul.f32 1.442695, %v296_v14  ;;  %v324_v18 = vmul.f32 1.442695, %v299_v15  ;;  %v351_v34 = vadd.f32 1.0, %v1298_v16 }
 0x182   :  { %v267_v19 = vpop.xlane.xlu1 %266  ;;  %v273_v33 = vpop.xlane.xlu0 %272 }
 0x183   :  { %v294_v37 = vsub.f32 0.0, %v267_v19  ;;  %v297_v38 = vsub.f32 0.0, %v273_v33  ;;  %1311 = vpow2.f32 %v318_v17  ;;  %v403_v33 = vsel %vm388_vm1, 1.0, %v1657_v39 }
 0x184   :  { %v1300_v40 = vpop.eup %1299  ;;  %1313 = vpow2.f32 %v324_v18  ;;  %v401_v39 = vsel %vm388_vm1, 1.0, %v1651_v35 }
 0x185   :  { %v1302_v41 = vpop.eup %1301  ;;  %v314_v42 = vmul.f32 1.442695, %v294_v37  ;;  %v320_v44 = vmul.f32 1.442695, %v297_v38  ;;  %1315 = vrcp.f32 %v351_v34  ;;  %v350_v47 = vadd.f32 1.0, %v1300_v40 }
 0x186   :  { %v353_v43 = vadd.f32 1.0, %v1302_v41  ;;  %v263_v45 = vpop.xlane.xlu1 %262  ;;  %v269_v46 = vpop.xlane.xlu0 %268  ;;  %v402_v40 = vsel %vm388_vm1, 1.0, %v1645_v32 }
 0x187   :  { %v292_v48 = vsub.f32 0.0, %v263_v45  ;;  %v295_v49 = vsub.f32 0.0, %v269_v46 }
 0x188   :  { %v1304_v50 = vpop.eup %1303  ;;  %1317 = vrcp.f32 %v353_v43 }
 0x189   :  { %v1306_v51 = vpop.eup %1305  ;;  %1319 = vpow2.f32 %v314_v42  ;;  %v310_v52 = vmul.f32 1.442695, %v292_v48  ;;  %v316_v54 = vmul.f32 1.442695, %v295_v49  ;;  %v348_v57 = vadd.f32 1.0, %v1304_v50 }
 0x18a   :  { %v352_v53 = vadd.f32 1.0, %v1306_v51  ;;  %1321 = vpow2.f32 %v320_v44  ;;  %v259_v55 = vpop.xlane.xlu1 %258  ;;  %v265_v56 = vpop.xlane.xlu0 %264  ;;  %v400_v48 = vsel %vm388_vm1, 1.0, %v1641_v30  ;;  %v399_v51 = vsel %vm388_vm1, 1.0, %v1643_v31 }
 0x18b   :  { %1323 = vrcp.f32 %v350_v47  ;;  %v290_v58 = vsub.f32 0.0, %v259_v55  ;;  %v293_v59 = vsub.f32 0.0, %v265_v56  ;;  %v398_v56 = vsel %vm388_vm1, 1.0, %v1637_v28 }
 0x18c   :  { %1325 = vrcp.f32 %v352_v53  ;;  %v1308_v61 = vpop.eup %1307  ;;  %v396_v28 = vsel %vm388_vm1, 1.0, %v1633_v26  ;;  %v394_v26 = vsel %vm388_vm1, 1.0, %v1629_v24  ;;  %v392_v24 = vsel %vm388_vm1, 1.0, %v1625_v22 }
 0x18d   :  { %1327 = vpow2.f32 %v310_v52  ;;  %v306_v62 = vmul.f32 1.442695, %v290_v58  ;;  %v349_v63 = vadd.f32 1.0, %v1308_v61  ;;  %v312_v0 = vmul.f32 1.442695, %v293_v59  ;;  %v1310_v2 = vpop.eup %1309 }
 0x18e   :  { %1329 = vpow2.f32 %v316_v54  ;;  %v261_v1 = vpop.xlane.xlu0 %260  ;;  %v346_v8 = vadd.f32 1.0, %v1310_v2  ;;  %v390_v22 = vsel %vm388_vm1, 1.0, %v1621_v20  ;;  %v422_v20 = vld [vmem:[%s2135_s4 + $0x8] sm:$0xff] }
 0x18f   :  { %1331 = vrcp.f32 %v348_v57  ;;  %v291_v3 = vsub.f32 0.0, %v261_v1  ;;  %v397_v57 = vsel %vm388_vm1, 1.0, %v1639_v29  ;;  %v395_v29 = vsel %vm388_vm1, 1.0, %v1635_v27 }
 0x190   :  { %1333 = vrcp.f32 %v349_v63  ;;  %v1312_v5 = vpop.eup %1311  ;;  %v393_v27 = vsel %vm388_vm1, 1.0, %v1631_v25  ;;  %v391_v25 = vsel %vm388_vm1, 1.0, %v1627_v23 }
 0x191   :  { %1335 = vpow2.f32 %v306_v62  ;;  %v308_v6 = vmul.f32 1.442695, %v291_v3  ;;  %v1314_v7 = vpop.eup %1313  ;;  %v344_v13 = vadd.f32 1.0, %v1312_v5 }
 0x192   :  { %1337 = vpow2.f32 %v312_v0  ;;  %v347_v9 = vadd.f32 1.0, %v1314_v7  ;;  %v1316_v10 = vpop.eup %1315 }
 0x193   :  { %1339 = vpow2.f32 %v308_v6  ;;  %v418_v43 = vmul.f32 %v1316_v10, %v402_v40 }
 0x194   :  { %1341 = vrcp.f32 %v347_v9 }
 0x195   :  { %v1318_v11 = vpop.eup %1317  ;;  %1343 = vrcp.f32 %v346_v8 }
 0x196   :  { %v1320_v14 = vpop.eup %1319  ;;  %v420_v15 = vmul.f32 %v1318_v11, %v404_v12  ;;  %1345 = vrcp.f32 %v344_v13  ;;  %v389_v11 = vsel %vm388_vm1, 1.0, %v1623_v21  ;;  %v428_v12 = vld [vmem:[%s2135_s4 + $0x38] sm:$0xff]  ;;  %v429_v21 = vld [vmem:[%s2135_s4 + $0x40] sm:$0xff]  ;;  %v430_v13 = vld [vmem:[%s2135_s4 + $0x48] sm:$0xff] }
 0x197   :  { %v1322_v16 = vpop.eup %1321  ;;  %v342_v34 = vadd.f32 1.0, %v1320_v14  ;;  %v424_v14 = vld [vmem:[%s2135_s4 + $0x18] sm:$0xff] }
 0x198   :  { %v1324_v17 = vpop.eup %1323  ;;  %v345_v18 = vadd.f32 1.0, %v1322_v16  ;;  %1203 = vmatprep.subr.mxu0 %v420_v15  ;;  %1259 = vmatprep.subr.mxu1 %v420_v15  ;;  %v425_v16 = vld [vmem:[%s2135_s4 + $0x20] sm:$0xff] }
 0x199   :  { %v1326_v19 = vpop.eup %1325  ;;  %1204 = vmatpush3.msra.mxu0 %v420_v15  ;;  %1275 = vmatpush3.msra.mxu1 %v420_v15  ;;  %v417_v47 = vmul.f32 %v1324_v17, %v401_v39  ;;  %v431_v15 = vld [vmem:[%s2135_s4 + $0x50] sm:$0xff]  ;;  %v432_v17 = vld [vmem:[%s2135_s4 + $0x58] sm:$0xff] }
 0x19a   :  { %v1328_v36 = vpop.eup %1327  ;;  %1347 = vrcp.f32 %v345_v18  ;;  %v419_v37 = vmul.f32 %v1326_v19, %v403_v33  ;;  %v426_v18 = vld [vmem:[%s2135_s4 + $0x28] sm:$0xff]  ;;  %v433_v19 = vld [vmem:[%s2135_s4 + $0x60] sm:$0xff] }
 0x19b   :  { %v1330_v38 = vpop.eup %1329  ;;  %1349 = vrcp.f32 %v342_v34  ;;  %v340_v45 = vadd.f32 1.0, %v1328_v36  ;;  %v434_v33 = vld [vmem:[%s2135_s4 + $0x68] sm:$0xff]  ;;  %v435_v34 = vld [vmem:[%s2135_s4 + $0x70] sm:$0xff]  ;;  %v436_v36 = vld [vmem:[%s2135_s4 + $0x78] sm:$0xff] }
 0x19c   :  { %v1332_v41 = vpop.eup %1331  ;;  %v343_v42 = vadd.f32 1.0, %v1330_v38  ;;  %1205 = vmatprep.subr.mxu0 %v419_v37  ;;  %1260 = vmatprep.subr.mxu1 %v419_v37 }
 0x19d   :  { %v1334_v44 = vpop.eup %1333  ;;  %1206 = vmatpush3.msra.mxu0 %v419_v37  ;;  %1276 = vmatpush3.msra.mxu1 %v419_v37  ;;  %v415_v30 = vmul.f32 %v1332_v41, %v399_v51  ;;  %v1511_v37 = vmov 32  }
 0x19e   :  { %v1336_v46 = vpop.eup %1335  ;;  %1351 = vrcp.f32 %v343_v42  ;;  %1207 = vmatprep.subr.mxu0 %v418_v43  ;;  %1261 = vmatprep.subr.mxu1 %v418_v43  ;;  %v416_v35 = vmul.f32 %v1334_v44, %v400_v48 }
 0x19f   :  { %v1338_v32 = vpop.eup %1337  ;;  %1208 = vmatpush3.msra.mxu0 %v418_v43  ;;  %1277 = vmatpush3.msra.mxu1 %v418_v43  ;;  %1353 = vrcp.f32 %v340_v45  ;;  %v338_v54 = vadd.f32 1.0, %v1336_v46 }
 0x1a0   :  { %v1340_v49 = vpop.eup %1339  ;;  %v341_v50 = vadd.f32 1.0, %v1338_v32  ;;  %1209 = vmatprep.subr.mxu0 %v417_v47  ;;  %1262 = vmatprep.subr.mxu1 %v417_v47 }
 0x1a1   :  { %v339_v52 = vadd.f32 1.0, %v1340_v49  ;;  %1210 = vmatpush3.msra.mxu0 %v417_v47  ;;  %1278 = vmatpush3.msra.mxu1 %v417_v47  ;;  %v1342_v53 = vpop.eup %1341 }
 0x1a2   :  { %1355 = vrcp.f32 %v341_v50  ;;  %1211 = vmatprep.subr.mxu0 %v416_v35  ;;  %1263 = vmatprep.subr.mxu1 %v416_v35  ;;  %v1344_v55 = vpop.eup %1343  ;;  %v414_v31 = vmul.f32 %v1342_v53, %v398_v56 }
 0x1a3   :  { %1212 = vmatpush3.msra.mxu0 %v416_v35  ;;  %1279 = vmatpush3.msra.mxu1 %v416_v35  ;;  %1357 = vrcp.f32 %v339_v52  ;;  %v1346_v58 = vpop.eup %1345  ;;  %v413_v59 = vmul.f32 %v1344_v55, %v397_v57 }
 0x1a4   :  { %1213 = vmatprep.subr.mxu0 %v415_v30  ;;  %1264 = vmatprep.subr.mxu1 %v415_v30  ;;  %1359 = vrcp.f32 %v338_v54  ;;  %v411_v63 = vmul.f32 %v1346_v58, %v395_v29 }
 0x1a5   :  { %1214 = vmatpush3.msra.mxu0 %v415_v30  ;;  %1280 = vmatpush3.msra.mxu1 %v415_v30 }
 0x1a6   :  { %1215 = vmatprep.subr.mxu0 %v414_v31  ;;  %1265 = vmatprep.subr.mxu1 %v414_v31 }
 0x1a7   :  { %v1348_v60 = vpop.eup %1347  ;;  %1216 = vmatpush3.msra.mxu0 %v414_v31  ;;  %1281 = vmatpush3.msra.mxu1 %v414_v31 }
 0x1a8   :  { %1217 = vmatprep.subr.mxu0 %v413_v59  ;;  %1266 = vmatprep.subr.mxu1 %v413_v59  ;;  %v412_v61 = vmul.f32 %v1348_v60, %v396_v28  ;;  %v1350_v62 = vpop.eup %1349 }
 0x1a9   :  { %1218 = vmatpush3.msra.mxu0 %v413_v59  ;;  %1282 = vmatpush3.msra.mxu1 %v413_v59  ;;  %v409_v3 = vmul.f32 %v1350_v62, %v393_v27 }
 0x1aa   :  { %1219 = vmatprep.subr.mxu0 %v412_v61  ;;  %1267 = vmatprep.subr.mxu1 %v412_v61 }
 0x1ab   :  { %v1352_v0 = vpop.eup %1351  ;;  %1220 = vmatpush3.msra.mxu0 %v412_v61  ;;  %1283 = vmatpush3.msra.mxu1 %v412_v61 }
 0x1ac   :  { %1221 = vmatprep.subr.mxu0 %v411_v63  ;;  %1268 = vmatprep.subr.mxu1 %v411_v63  ;;  %v410_v1 = vmul.f32 %v1352_v0, %v394_v26  ;;  %v1354_v2 = vpop.eup %1353 }
 0x1ad   :  { %1222 = vmatpush3.msra.mxu0 %v411_v63  ;;  %1284 = vmatpush3.msra.mxu1 %v411_v63  ;;  %v407_v8 = vmul.f32 %v1354_v2, %v391_v25 }
 0x1ae   :  { %1223 = vmatprep.subr.mxu0 %v410_v1  ;;  %1269 = vmatprep.subr.mxu1 %v410_v1 }
 0x1af   :  { %v1356_v5 = vpop.eup %1355  ;;  %1224 = vmatpush3.msra.mxu0 %v410_v1  ;;  %1285 = vmatpush3.msra.mxu1 %v410_v1 }
 0x1b0   :  { %1225 = vmatprep.subr.mxu0 %v409_v3  ;;  %1270 = vmatprep.subr.mxu1 %v409_v3  ;;  %v408_v6 = vmul.f32 %v1356_v5, %v392_v24  ;;  %v1358_v7 = vpop.eup %1357  ;;  %v1819_v24 = vld [vmem:[%s2133_s2] ss:$0 sm:$0xff]  ;;  %s1512_s2 = smov [#allocation2]  }
 0x1b1   :  { %1226 = vmatpush3.msra.mxu0 %v409_v3  ;;  %1286 = vmatpush3.msra.mxu1 %v409_v3  ;;  %v1360_v9 = vpop.eup %1359  ;;  %v406_v10 = vmul.f32 %v1358_v7, %v390_v22  ;;  %s1074_s11 = sshll.u32 %s1512_s2, 4  ;;  %s1075_s11 = int_to_ptr.vmem [resolvable:$true] %s1074_s11 }
 0x1b2   :  { %1227 = vmatprep.subr.mxu0 %v408_v6  ;;  %1271 = vmatprep.subr.mxu1 %v408_v6  ;;  %v405_v23 = vmul.f32 %v1360_v9, %v389_v11  ;;  %s1489_s12 = scalar_lea.vmem %s1075_s11, 2048  ;;  %p1494_p1 = scmp.lt.s32.totalorder %s1075_s11, %s1075_s11 }
 0x1b3   :  { %1228 = vmatpush3.msra.mxu0 %v408_v6  ;;  %1287 = vmatpush3.msra.mxu1 %v408_v6  ;;  %p1490_p0 = scmp.ne.s32.totalorder %s1075_s11, %s1489_s12  ;;  %p1495_p2 = scmp.lt.s32.totalorder %s1489_s12, %s1489_s12 }
 0x1b4   :  { %1229 = vmatprep.subr.mxu0 %v407_v8  ;;  %1272 = vmatprep.subr.mxu1 %v407_v8 }
 0x1b5   :  { %1230 = vmatpush3.msra.mxu0 %v407_v8  ;;  %1288 = vmatpush3.msra.mxu1 %v407_v8  ;;  %p1496_p3 = por %p1495_p2, %p1494_p1 }
 0x1b6   :  { %1231 = vmatprep.subr.mxu0 %v406_v10  ;;  %1273 = vmatprep.subr.mxu1 %v406_v10 }
 0x1b7   :  { %1232 = vmatpush3.msra.mxu0 %v406_v10  ;;  %1289 = vmatpush3.msra.mxu1 %v406_v10  ;;  %p1497_p4 = pnand %p1496_p3, %p1490_p0 }
 0x1b8   :  { %1233 = vmatprep.subr.mxu0 %v405_v23  ;;  %1274 = vmatprep.subr.mxu1 %v405_v23 }
 0x1b9   :  { %1234 = vmatpush3.msra.mxu0 %v405_v23  ;;  %1290 = vmatpush3.msra.mxu1 %v405_v23 }
 0x1ba   :  { %1236 = vmatmul.mubr.f32.vlgmr.msra.gmra.mxu0 %v422_v20  ;;  %1245 = vmatmul.mubr.f32.vlgmr.msra.gmra.mxu1 %v428_v12 }
 0x1bb   :  { %1247 = vmatprep.mubr.f32.mxu1 %v429_v21  ;;  %1238 = vmatprep.mubr.f32.mxu0 %v423_v4 }
 0x1bc   :  { %1295 = vset.pattern.permute.xlu1 %v1511_v37  ;;  %1296 = vset.pattern.permute.xlu0 %v1511_v37 }
 0x1be   :  { %1248 = vmatmul.mubr.f32.gmra.mxu1 %v430_v13  ;;  %1239 = vmatmul.mubr.f32.gmra.mxu0 %v424_v14 }
 0x1bf   :  { %1250 = vmatprep.mubr.f32.mxu1 %v431_v15  ;;  %1241 = vmatprep.mubr.f32.mxu0 %v425_v16 }
 0x1c2   :  { %1251 = vmatmul.mubr.f32.gmra.mxu1 %v432_v17  ;;  %1242 = vmatmul.mubr.f32.gmra.mxu0 %v426_v18 }
 0x1c3   :  { %1253 = vmatprep.mubr.f32.mxu1 %v433_v19 }
 0x1c6   :  { %1254 = vmatmul.mubr.f32.gmra.mxu1 %v434_v33 }
 0x1c7   :  { %1256 = vmatprep.mubr.f32.mxu1 %v435_v34 }
 0x1ca   :  { %1257 = vmatmul.mubr.f32.gmra.mxu1 %v436_v36 }
 0x27a   :  { %v1237_v38 = vpop.f32.mrf.mxu0  ;;  %v1771_v40 = vpop.f32.mrf.mxu1 }
 0x27b   :  { %v584_v41 = vmax.f32 %v1237_v38, 1e-30  ;;  %v590_v39 = vmax.f32 %v1771_v40, 1e-30 }
 0x27c   :  { %v1773_v42 = vpop.f32.mrf.mxu0  ;;  %v1775_v43 = vpop.f32.mrf.mxu1 }
 0x27d   :  { %v583_v44 = vmax.f32 %v1773_v42, 1e-30  ;;  %606 = vperm.xlu1 %1295, %v584_v41   ;;  %v589_v48 = vmax.f32 %v1775_v43, 1e-30 }
 0x27e   :  { %v1779_v45 = vpop.f32.mrf.mxu1  ;;  %v1788_v50 = vpop.f32.mrf.mxu0 }
 0x27f   :  { %601 = vperm.xlu0 %1296, %v583_v44   ;;  %v592_v46 = vmax.f32 %v1779_v45, 1e-30  ;;  %v586_v51 = vmax.f32 %v1788_v50, 1e-30 }
 0x280   :  { %v1782_v47 = vpop.f32.mrf.mxu1  ;;  %v1796_v54 = vpop.f32.mrf.mxu0 }
 0x281   :  { %636 = vperm.xlu1 %1295, %v590_v39   ;;  %v585_v56 = vmax.f32 %v1796_v54, 1e-30  ;;  %v591_v57 = vmax.f32 %v1782_v47, 1e-30 }
 0x282   :  { %v1784_v32 = vpop.f32.mrf.mxu1  ;;  %v1805_v58 = vpop.f32.mrf.mxu0 }
 0x283   :  { %646 = vperm.xlu0 %1296, %v592_v46   ;;  %v594_v49 = vmax.f32 %v1784_v32, 1e-30  ;;  %v588_v59 = vmax.f32 %v1805_v58, 1e-30 }
 0x284   :  { %v1790_v35 = vpop.f32.mrf.mxu1  ;;  %v1808_v60 = vpop.f32.mrf.mxu0 }
 0x285   :  { %631 = vperm.xlu1 %1295, %v589_v48   ;;  %v587_v28 = vmax.f32 %v1808_v60, 1e-30  ;;  %v593_v61 = vmax.f32 %v1790_v35, 1e-30 }
 0x286   :  { %v1793_v52 = vpop.f32.mrf.mxu1 }
 0x287   :  { %656 = vperm.xlu0 %1296, %v594_v49   ;;  %v596_v53 = vmax.f32 %v1793_v52, 1e-30 }
 0x288   :  { %v1798_v30 = vpop.f32.mrf.mxu1 }
 0x289   :  { %616 = vperm.xlu1 %1295, %v586_v51   ;;  %v595_v29 = vmax.f32 %v1798_v30, 1e-30 }
 0x28a   :  { %v1800_v55 = vpop.f32.mrf.mxu1 }
 0x28b   :  { %666 = vperm.xlu0 %1296, %v596_v53   ;;  %v598_v31 = vmax.f32 %v1800_v55, 1e-30 }
 0x28c   :  { %v1813_v62 = vpop.f32.mrf.mxu1 }
 0x28d   :  { %611 = vperm.xlu1 %1295, %v585_v56   ;;  %v597_v63 = vmax.f32 %v1813_v62, 1e-30 }
 0x28f   :  { %676 = vperm.xlu0 %1296, %v598_v31  }
 0x291   :  { %641 = vperm.xlu1 %1295, %v591_v57  }
 0x295   :  { %626 = vperm.xlu1 %1295, %v588_v59  }
 0x299   :  { %621 = vperm.xlu1 %1295, %v587_v28  }
 0x29d   :  { %651 = vperm.xlu1 %1295, %v593_v61  }
 0x2a1   :  { %661 = vperm.xlu1 %1295, %v595_v29  }
 0x2a5   :  { %671 = vperm.xlu1 %1295, %v597_v63  }
 0x2f8   :  { %v607_v0 = vpop.permute.xlu1 %606 }
 0x2f9   :  { %1361 = vrcp.f32 %v607_v0 }
 0x2fa   :  { %v602_v26 = vpop.permute.xlu0 %601 }
 0x2fb   :  { %1363 = vrcp.f32 %v602_v26 }
 0x2fc   :  { %v637_v1 = vpop.permute.xlu1 %636 }
 0x2fd   :  { %1365 = vrcp.f32 %v637_v1 }
 0x2fe   :  { %v647_v2 = vpop.permute.xlu0 %646 }
 0x300   :  { %v632_v27 = vpop.permute.xlu1 %631 }
 0x301   :  { %1367 = vrcp.f32 %v632_v27 }
 0x302   :  { %1369 = vrcp.f32 %v647_v2  ;;  %v657_v8 = vpop.permute.xlu0 %656 }
 0x304   :  { %v617_v3 = vpop.permute.xlu1 %616 }
 0x305   :  { %1371 = vrcp.f32 %v617_v3 }
 0x306   :  { %v1362_v5 = vpop.eup %1361  ;;  %v667_v21 = vpop.permute.xlu0 %666 }
 0x307   :  { %v1821_v6 = vmul.f32 %v1362_v5, %v1237_v38 }
 0x308   :  { %v612_v7 = vpop.permute.xlu1 %611  ;;  %v1364_v25 = vpop.eup %1363 }
 0x309   :  { %1373 = vrcp.f32 %v612_v7  ;;  %v718_v9 = vmul.f32 %v1819_v24, %v1821_v6  ;;  %v1831_v20 = vmul.f32 %v1364_v25, %v1773_v42 }
 0x30a   :  { %v1366_v22 = vpop.eup %1365  ;;  %v677_v33 = vpop.permute.xlu0 %676 }
 0x30b   :  { %735 = vadd.xlane.f32.xlu0 %v718_v9  ;;  %v1826_v10 = vmul.f32 %v1366_v22, %v1771_v40  ;;  %v717_v16 = vmul.f32 %v1819_v24, %v1831_v20 }
 0x30c   :  { %v642_v11 = vpop.permute.xlu1 %641 }
 0x30d   :  { %1375 = vrcp.f32 %v642_v11  ;;  %v724_v23 = vmul.f32 %v1819_v24, %v1826_v10 }
 0x30e   :  { %v1368_v12 = vpop.eup %1367  ;;  %1377 = vrcp.f32 %v657_v8 }
 0x30f   :  { %747 = vadd.xlane.f32.xlu1 %v724_v23  ;;  %v1834_v4 = vmul.f32 %v1368_v12, %v1775_v43  ;;  %v1370_v14 = vpop.eup %1369 }
 0x310   :  { %v627_v13 = vpop.permute.xlu1 %626  ;;  %v1846_v36 = vmul.f32 %v1370_v14, %v1779_v45 }
 0x311   :  { %1379 = vrcp.f32 %v627_v13  ;;  %v723_v15 = vmul.f32 %v1819_v24, %v1834_v4 }
 0x312   :  { %v1372_v17 = vpop.eup %1371  ;;  %1381 = vrcp.f32 %v667_v21  ;;  %v726_v42 = vmul.f32 %v1819_v24, %v1846_v36 }
 0x313   :  { %745 = vadd.xlane.f32.xlu0 %v723_v15  ;;  %733 = vadd.xlane.f32.xlu1 %v717_v16  ;;  %v1841_v18 = vmul.f32 %v1372_v17, %v1788_v50 }
 0x314   :  { %v622_v19 = vpop.permute.xlu1 %621 }
 0x315   :  { %1383 = vrcp.f32 %v622_v19  ;;  %v720_v34 = vmul.f32 %v1819_v24, %v1841_v18 }
 0x316   :  { %v1374_v37 = vpop.eup %1373  ;;  %1385 = vrcp.f32 %v677_v33 }
 0x317   :  { %739 = vadd.xlane.f32.xlu1 %v720_v34  ;;  %v1849_v38 = vmul.f32 %v1374_v37, %v1796_v54 }
 0x318   :  { %v652_v40 = vpop.permute.xlu1 %651 }
 0x319   :  { %1387 = vrcp.f32 %v652_v40  ;;  %v719_v41 = vmul.f32 %v1819_v24, %v1849_v38 }
 0x31a   :  { %v1376_v43 = vpop.eup %1375 }
 0x31b   :  { %737 = vadd.xlane.f32.xlu0 %v719_v41  ;;  %751 = vadd.xlane.f32.xlu1 %v726_v42  ;;  %v1856_v44 = vmul.f32 %v1376_v43, %v1782_v47  ;;  %v1378_v45 = vpop.eup %1377 }
 0x31c   :  { %v662_v39 = vpop.permute.xlu1 %661  ;;  %v1866_v47 = vmul.f32 %v1378_v45, %v1784_v32 }
 0x31d   :  { %1389 = vrcp.f32 %v662_v39  ;;  %v725_v46 = vmul.f32 %v1819_v24, %v1856_v44 }
 0x31e   :  { %v1380_v48 = vpop.eup %1379  ;;  %v728_v57 = vmul.f32 %v1819_v24, %v1866_v47 }
 0x31f   :  { %749 = vadd.xlane.f32.xlu0 %v725_v46  ;;  %v1861_v49 = vmul.f32 %v1380_v48, %v1805_v58  ;;  %v1382_v51 = vpop.eup %1381 }
 0x320   :  { %v672_v50 = vpop.permute.xlu1 %671  ;;  %v1876_v59 = vmul.f32 %v1382_v51, %v1793_v52 }
 0x321   :  { %1391 = vrcp.f32 %v672_v50  ;;  %v722_v53 = vmul.f32 %v1819_v24, %v1861_v49 }
 0x322   :  { %v1384_v54 = vpop.eup %1383 }
 0x323   :  { %743 = vadd.xlane.f32.xlu1 %v722_v53  ;;  %v1869_v56 = vmul.f32 %v1384_v54, %v1808_v60  ;;  %v1386_v31 = vpop.eup %1385  ;;  %v730_v60 = vmul.f32 %v1819_v24, %v1876_v59 }
 0x324   :  { %v1886_v29 = vmul.f32 %v1386_v31, %v1800_v55  ;;  %v894_v31 = vmax.f32 %v1821_v6, 0.0 }
 0x325   :  { %v721_v58 = vmul.f32 %v1819_v24, %v1869_v56 }
 0x326   :  { %v1388_v28 = vpop.eup %1387  ;;  %v732_v0 = vmul.f32 %v1819_v24, %v1886_v29 }
 0x327   :  { %755 = vadd.xlane.f32.xlu1 %v728_v57  ;;  %741 = vadd.xlane.f32.xlu0 %v721_v58  ;;  %v1879_v32 = vmul.f32 %v1388_v28, %v1790_v35 }
 0x329   :  { %v727_v61 = vmul.f32 %v1819_v24, %v1879_v32 }
 0x32a   :  { %v1390_v63 = vpop.eup %1389 }
 0x32b   :  { %759 = vadd.xlane.f32.xlu1 %v730_v60  ;;  %753 = vadd.xlane.f32.xlu0 %v727_v61  ;;  %v1889_v52 = vmul.f32 %v1390_v63, %v1798_v30  ;;  %v910_v60 = vmin.f32 %v1821_v6, 0.0  ;;  %v893_v61 = vmax.f32 %v1831_v20, 0.0  ;;  %v909_v63 = vmin.f32 %v1831_v20, 0.0 }
 0x32d   :  { %v729_v35 = vmul.f32 %v1819_v24, %v1889_v52 }
 0x32e   :  { %v1392_v26 = vpop.eup %1391 }
 0x32f   :  { %763 = vadd.xlane.f32.xlu1 %v732_v0  ;;  %757 = vadd.xlane.f32.xlu0 %v729_v35  ;;  %v1896_v1 = vmul.f32 %v1392_v26, %v1813_v62 }
 0x331   :  { %v731_v55 = vmul.f32 %v1819_v24, %v1896_v1 }
 0x333   :  { %761 = vadd.xlane.f32.xlu0 %v731_v55  ;;  %v900_v55 = vmax.f32 %v1826_v10, 0.0 }
 0x394   :  { %v1900_v27 = vpop.xlane.xlu0 %735 }
 0x395   :  { %v766_v30 = vmin.f32 %v1900_v27, 20.0  ;;  %vm782_vm2 = vcmp.gt.f32.partialorder %v1900_v27, 20.0 }
 0x397   :  { %v799_v2 = vmul.f32 1.442695, %v766_v30  ;;  %v916_v30 = vmin.f32 %v1826_v10, 0.0  ;;  %v904_v10 = vmax.f32 %v1866_v47, 0.0 }
 0x398   :  { %v1903_v3 = vpop.xlane.xlu1 %747 }
 0x399   :  { %1393 = vpow2.f32 %v799_v2  ;;  %v772_v5 = vmin.f32 %v1903_v3, 20.0  ;;  %v902_v2 = vmax.f32 %v1846_v36, 0.0  ;;  %vm788_vm3 = vcmp.gt.f32.partialorder %v1903_v3, 20.0 }
 0x39b   :  { %v811_v7 = vmul.f32 1.442695, %v772_v5  ;;  %v918_v5 = vmin.f32 %v1846_v36, 0.0 }
 0x39c   :  { %v1906_v25 = vpop.xlane.xlu0 %745  ;;  %v1908_v8 = vpop.xlane.xlu1 %733 }
 0x39d   :  { %1395 = vpow2.f32 %v811_v7  ;;  %v771_v62 = vmin.f32 %v1906_v25, 20.0  ;;  %v765_v24 = vmin.f32 %v1908_v8, 20.0  ;;  %vm787_vm4 = vcmp.gt.f32.partialorder %v1906_v25, 20.0 }
 0x39e   :  { %vm781_vm5 = vcmp.gt.f32.partialorder %v1908_v8, 20.0 }
 0x39f   :  { %v809_v9 = vmul.f32 1.442695, %v771_v62  ;;  %v797_v22 = vmul.f32 1.442695, %v765_v24  ;;  %v899_v62 = vmax.f32 %v1834_v4, 0.0 }
 0x3a0   :  { %v1912_v11 = vpop.xlane.xlu1 %739 }
 0x3a1   :  { %1397 = vpow2.f32 %v809_v9  ;;  %v768_v23 = vmin.f32 %v1912_v11, 20.0  ;;  %vm784_vm6 = vcmp.gt.f32.partialorder %v1912_v11, 20.0 }
 0x3a2   :  { %1399 = vpow2.f32 %v797_v22 }
 0x3a3   :  { %v803_v12 = vmul.f32 1.442695, %v768_v23  ;;  %v915_v23 = vmin.f32 %v1834_v4, 0.0 }
 0x3a4   :  { %v1915_v21 = vpop.xlane.xlu0 %737  ;;  %v1917_v13 = vpop.xlane.xlu1 %751 }
 0x3a5   :  { %1401 = vpow2.f32 %v803_v12  ;;  %v767_v14 = vmin.f32 %v1915_v21, 20.0  ;;  %v774_v15 = vmin.f32 %v1917_v13, 20.0  ;;  %v920_v12 = vmin.f32 %v1866_v47, 0.0 }
 0x3a6   :  { %v1394_v16 = vpop.eup %1393  ;;  %vm783_vm7 = vcmp.gt.f32.partialorder %v1915_v21, 20.0  ;;  %vm790_vm8 = vcmp.gt.f32.partialorder %v1917_v13, 20.0 }
 0x3a7   :  { %v830_v17 = vadd.f32 1.0, %v1394_v16  ;;  %v801_v19 = vmul.f32 1.442695, %v767_v14  ;;  %v815_v33 = vmul.f32 1.442695, %v774_v15  ;;  %v896_v16 = vmax.f32 %v1841_v18, 0.0 }
 0x3a8   :  { %v1921_v34 = vpop.xlane.xlu0 %749 }
 0x3a9   :  { %1403 = vlog2.f32 %v830_v17  ;;  %v773_v37 = vmin.f32 %v1921_v34, 20.0  ;;  %vm789_vm9 = vcmp.gt.f32.partialorder %v1921_v34, 20.0 }
 0x3aa   :  { %v1396_v40 = vpop.eup %1395  ;;  %1405 = vpow2.f32 %v801_v19 }
 0x3ab   :  { %v836_v41 = vadd.f32 1.0, %v1396_v40  ;;  %1407 = vpow2.f32 %v815_v33  ;;  %v813_v42 = vmul.f32 1.442695, %v773_v37  ;;  %v912_v33 = vmin.f32 %v1841_v18, 0.0 }
 0x3ac   :  { %v1924_v43 = vpop.xlane.xlu1 %743 }
 0x3ad   :  { %1409 = vlog2.f32 %v836_v41  ;;  %v770_v39 = vmin.f32 %v1924_v43, 20.0  ;;  %vm786_vm11 = vcmp.gt.f32.partialorder %v1924_v43, 20.0 }
 0x3ae   :  { %v1398_v45 = vpop.eup %1397  ;;  %1411 = vpow2.f32 %v813_v42 }
 0x3af   :  { %v1400_v46 = vpop.eup %1399  ;;  %v835_v48 = vadd.f32 1.0, %v1398_v45  ;;  %v807_v50 = vmul.f32 1.442695, %v770_v39 }
 0x3b0   :  { %v829_v51 = vadd.f32 1.0, %v1400_v46  ;;  %v1927_v53 = vpop.xlane.xlu0 %741  ;;  %v1929_v54 = vpop.xlane.xlu1 %755 }
 0x3b1   :  { %1413 = vlog2.f32 %v835_v48  ;;  %v769_v57 = vmin.f32 %v1927_v53, 20.0  ;;  %v776_v58 = vmin.f32 %v1929_v54, 20.0  ;;  %vm785_vm13 = vcmp.gt.f32.partialorder %v1927_v53, 20.0 }
 0x3b2   :  { %v1402_v28 = vpop.eup %1401  ;;  %1415 = vlog2.f32 %v829_v51  ;;  %v906_v51 = vmax.f32 %v1876_v59, 0.0  ;;  %vm792_vm14 = vcmp.gt.f32.partialorder %v1929_v54, 20.0 }
 0x3b3   :  { %v832_v0 = vadd.f32 1.0, %v1402_v28  ;;  %1417 = vpow2.f32 %v807_v50  ;;  %v805_v35 = vmul.f32 1.442695, %v769_v57  ;;  %v819_v26 = vmul.f32 1.442695, %v776_v58 }
 0x3b4   :  { %v1941_v7 = vpop.xlane.xlu0 %753  ;;  %v1943_v6 = vpop.xlane.xlu1 %759 }
 0x3b5   :  { %1419 = vlog2.f32 %v832_v0  ;;  %v775_v24 = vmin.f32 %v1941_v7, 20.0  ;;  %v778_v9 = vmin.f32 %v1943_v6, 20.0  ;;  %vm791_vm0 = vcmp.gt.f32.partialorder %v1941_v7, 20.0 }
 0x3b6   :  { %v1404_v22 = vpop.eup %1403  ;;  %1421 = vpow2.f32 %v805_v35  ;;  %vm794_vm1 = vcmp.gt.f32.partialorder %v1943_v6, 20.0 }
 0x3b7   :  { %v1406_v14 = vpop.eup %1405  ;;  %v848_v15 = vmul.f32 0.6931472, %v1404_v22  ;;  %1423 = vpow2.f32 %v819_v26  ;;  %v817_v17 = vmul.f32 1.442695, %v775_v24  ;;  %v823_v40 = vmul.f32 1.442695, %v778_v9 }
 0x3b8   :  { %v1408_v19 = vpop.eup %1407  ;;  %v831_v37 = vadd.f32 1.0, %v1406_v14  ;;  %v1954_v41 = vpop.xlane.xlu0 %757  ;;  %v922_v9 = vmin.f32 %v1876_v59, 0.0 }
 0x3b9   :  { %v1956_v42 = vpop.xlane.xlu1 %763  ;;  %v878_v39 = vsel %vm782_vm2, %v1900_v27, %v848_v15  ;;  %v838_v45 = vadd.f32 1.0, %v1408_v19  ;;  %1425 = vpow2.f32 %v817_v17  ;;  %v777_v46 = vmin.f32 %v1954_v41, 20.0 }
 0x3ba   :  { %v1410_v48 = vpop.eup %1409  ;;  %v926_v50 = vmul.f32 %v910_v60, %v878_v39  ;;  %1427 = vlog2.f32 %v831_v37  ;;  %v780_v57 = vmin.f32 %v1956_v42, 20.0  ;;  %v895_v19 = vmax.f32 %v1849_v38, 0.0 }
 0x3bb   :  { %v1412_v58 = vpop.eup %1411  ;;  %v860_v28 = vmul.f32 0.6931472, %v1410_v48  ;;  %1429 = vlog2.f32 %v838_v45  ;;  %v821_v0 = vmul.f32 1.442695, %v777_v46 }
 0x3bc   :  { %v1963_v35 = vadd.f32 %v926_v50, %v894_v31  ;;  %v837_v27 = vadd.f32 1.0, %v1412_v58  ;;  %1431 = vpow2.f32 %v823_v40  ;;  %v827_v26 = vmul.f32 1.442695, %v780_v57  ;;  %v1965_v24 = vpop.xlane.xlu0 %761 }
 0x3bd   :  { %v884_v60 = vsel %vm788_vm3, %v1903_v3, %v860_v28  ;;  %1433 = vpow2.f32 %v821_v0  ;;  %v779_v22 = vmin.f32 %v1965_v24, 20.0  ;;  %v911_v40 = vmin.f32 %v1849_v38, 0.0 }
 0x3be   :  { %v1414_v14 = vpop.eup %1413  ;;  %v974_v15 = vmin.f32 %v1963_v35, 0.0  ;;  %v932_v17 = vmul.f32 %v916_v30, %v884_v60  ;;  %1435 = vlog2.f32 %v837_v27  ;;  %v924_v30 = vmin.f32 %v1886_v29, 0.0 }
 0x3bf   :  { %v1416_v31 = vpop.eup %1415  ;;  %v858_v37 = vmul.f32 0.6931472, %v1414_v14  ;;  %1437 = vpow2.f32 %v827_v26  ;;  %v825_v39 = vmul.f32 1.442695, %v779_v22  ;;  %v913_v38 = vmin.f32 %v1869_v56, 0.0 }
 0x3c0   :  { %v1418_v45 = vpop.eup %1417  ;;  %v991_v3 = vmul.f32 1.442695, %v974_v15  ;;  %v1973_v46 = vadd.f32 %v932_v17, %v900_v55  ;;  %v846_v48 = vmul.f32 0.6931472, %v1416_v31  ;;  %v901_v17 = vmax.f32 %v1856_v44, 0.0 }
 0x3c1   :  { %v883_v50 = vsel %vm787_vm4, %v1906_v25, %v858_v37  ;;  %v834_v57 = vadd.f32 1.0, %v1418_v45  ;;  %1439 = vpow2.f32 %v825_v39  ;;  %vm958_vm10 = vcmp.gt.f32.partialorder %v1963_v35, 0.0 }
 0x3c2   :  { %v1420_v58 = vpop.eup %1419  ;;  %1441 = vpow2.f32 %v991_v3  ;;  %v980_v28 = vmin.f32 %v1973_v46, 0.0  ;;  %v931_v0 = vmul.f32 %v915_v23, %v883_v50  ;;  %v877_v55 = vsel %vm781_vm5, %v1908_v8, %v846_v48 }
 0x3c3   :  { %v1422_v27 = vpop.eup %1421  ;;  %v852_v26 = vmul.f32 0.6931472, %v1420_v58  ;;  %1443 = vlog2.f32 %v834_v57  ;;  %v925_v14 = vmul.f32 %v909_v63, %v877_v55  ;;  %v917_v8 = vmin.f32 %v1856_v44, 0.0 }
 0x3c4   :  { %v1424_v60 = vpop.eup %1423  ;;  %v1003_v25 = vmul.f32 1.442695, %v980_v28  ;;  %v1984_v22 = vadd.f32 %v931_v0, %v899_v62  ;;  %v833_v15 = vadd.f32 1.0, %v1422_v27  ;;  %v898_v62 = vmax.f32 %v1861_v49, 0.0 }
 0x3c5   :  { %v880_v23 = vsel %vm784_vm6, %v1912_v11, %v852_v26  ;;  %v840_v31 = vadd.f32 1.0, %v1424_v60  ;;  %v1994_v4 = vadd.f32 %v925_v14, %v893_v61  ;;  %v914_v11 = vmin.f32 %v1861_v49, 0.0 }
 0x3c6   :  { %v1426_v37 = vpop.eup %1425  ;;  %1445 = vpow2.f32 %v1003_v25  ;;  %v979_v39 = vmin.f32 %v1984_v22, 0.0  ;;  %v928_v63 = vmul.f32 %v912_v33, %v880_v23  ;;  %vm964_vm12 = vcmp.gt.f32.partialorder %v1973_v46, 0.0 }
 0x3c7   :  { %v1428_v45 = vpop.eup %1427  ;;  %1447 = vlog2.f32 %v833_v15  ;;  %v973_v48 = vmin.f32 %v1994_v4, 0.0  ;;  %v839_v33 = vadd.f32 1.0, %v1426_v37  ;;  %vm963_vm15 = vcmp.gt.f32.partialorder %v1984_v22, 0.0 }
 0x3c8   :  { %v1430_v44 = vpop.eup %1429  ;;  %v1001_v3 = vmul.f32 1.442695, %v979_v39  ;;  %v850_v50 = vmul.f32 0.6931472, %v1428_v45  ;;  %v2005_v61 = vadd.f32 %v928_v63, %v896_v16  ;;  %1449 = vlog2.f32 %v840_v31 }
 0x3c9   :  { %v1432_v20 = vpop.eup %1431  ;;  %v864_v57 = vmul.f32 0.6931472, %v1430_v44  ;;  %v989_v28 = vmul.f32 1.442695, %v973_v48  ;;  %v897_v39 = vmax.f32 %v1869_v56, 0.0  ;;  %vm957_vm2 = vcmp.gt.f32.partialorder %v1994_v4, 0.0 }
 0x3ca   :  { %v1434_v58 = vpop.eup %1433  ;;  %1451 = vpow2.f32 %v1001_v3  ;;  %v879_v0 = vsel %vm783_vm7, %v1915_v21, %v850_v50  ;;  %v842_v27 = vadd.f32 1.0, %v1432_v20  ;;  %v976_v26 = vmin.f32 %v2005_v61, 0.0 }
 0x3cb   :  { %v1436_v55 = vpop.eup %1435  ;;  %v927_v60 = vmul.f32 %v911_v40, %v879_v0  ;;  %v886_v25 = vsel %vm790_vm8, %v1917_v13, %v864_v57  ;;  %1453 = vpow2.f32 %v989_v28  ;;  %v841_v15 = vadd.f32 1.0, %v1434_v58 }
 0x3cc   :  { %v1438_v18 = vpop.eup %1437  ;;  %v934_v16 = vmul.f32 %v918_v5, %v886_v25  ;;  %v862_v14 = vmul.f32 0.6931472, %v1436_v55  ;;  %v995_v23 = vmul.f32 1.442695, %v976_v26  ;;  %1455 = vlog2.f32 %v839_v33 }
 0x3cd   :  { %v2017_v21 = vadd.f32 %v927_v60, %v895_v19  ;;  %v844_v31 = vadd.f32 1.0, %v1438_v18  ;;  %1457 = vlog2.f32 %v842_v27  ;;  %v903_v33 = vmax.f32 %v1879_v32, 0.0 }
 0x3ce   :  { %v1440_v37 = vpop.eup %1439  ;;  %v2021_v13 = vadd.f32 %v934_v16, %v902_v2  ;;  %v885_v40 = vsel %vm789_vm9, %v1921_v34, %v862_v14  ;;  %1459 = vpow2.f32 %v995_v23  ;;  %v905_v55 = vmax.f32 %v1889_v52, 0.0 }
 0x3cf   :  { %v1442_v5 = vpop.eup %1441  ;;  %v975_v45 = vmin.f32 %v2017_v21, 0.0  ;;  %v933_v63 = vmul.f32 %v917_v8, %v885_v40  ;;  %1461 = vlog2.f32 %v841_v15  ;;  %v843_v8 = vadd.f32 1.0, %v1440_v37 }
 0x3d0   :  { %v1444_v19 = vpop.eup %1443  ;;  %v1104_v44 = vadd.f32 -1.0, %v1442_v5  ;;  %v982_v36 = vmin.f32 %v2021_v13, 0.0  ;;  %1463 = vlog2.f32 %v844_v31  ;;  %v921_v16 = vmin.f32 %v1889_v52, 0.0 }
 0x3d1   :  { %v993_v2 = vmul.f32 1.442695, %v975_v45  ;;  %v2029_v3 = vadd.f32 %v933_v63, %v901_v17  ;;  %v856_v34 = vmul.f32 0.6931472, %v1444_v19  ;;  %vm793_vm3 = vcmp.gt.f32.partialorder %v1954_v41, 20.0 }
 0x3d2   :  { %v1038_v48 = vsel %vm958_vm10, %v1963_v35, %v1104_v44  ;;  %v1007_v50 = vmul.f32 1.442695, %v982_v36  ;;  %v919_v35 = vmin.f32 %v1879_v32, 0.0  ;;  %vm796_vm4 = vcmp.gt.f32.partialorder %v1956_v42, 20.0 }
 0x3d3   :  { %v1446_v20 = vpop.eup %1445  ;;  %1054 = vst [vmem:[#allocation2 + $0x8] sm:$0xff] %v1038_v48  ;;  %1465 = vpow2.f32 %v993_v2  ;;  %v981_v56 = vmin.f32 %v2029_v3, 0.0  ;;  %v882_v57 = vsel %vm786_vm11, %v1924_v43, %v856_v34  ;;  %vm960_vm5 = vcmp.gt.f32.partialorder %v2005_v61, 0.0 }
 0x3d4   :  { %v1448_v58 = vpop.eup %1447  ;;  %v1110_v17 = vadd.f32 -1.0, %v1446_v20  ;;  %1467 = vpow2.f32 %v1007_v50  ;;  %v930_v28 = vmul.f32 %v914_v11, %v882_v57  ;;  %vm959_vm6 = vcmp.gt.f32.partialorder %v2017_v21, 0.0 }
 0x3d5   :  { %v1005_v0 = vmul.f32 1.442695, %v981_v56  ;;  %v854_v27 = vmul.f32 0.6931472, %v1448_v58  ;;  %v1450_v26 = vpop.eup %1449  ;;  %1469 = vlog2.f32 %v843_v8  ;;  %vm966_vm7 = vcmp.gt.f32.partialorder %v2021_v13, 0.0 }
 0x3d6   :  { %v1044_v60 = vsel %vm964_vm12, %v1973_v46, %v1110_v17  ;;  %v2044_v43 = vadd.f32 %v930_v28, %v898_v62  ;;  %v868_v18 = vmul.f32 0.6931472, %v1450_v26  ;;  %vm965_vm8 = vcmp.gt.f32.partialorder %v2029_v3, 0.0 }
 0x3d7   :  { %v1452_v25 = vpop.eup %1451  ;;  %1060 = vst [vmem:[#allocation2 + $0x38] sm:$0xff] %v1044_v60  ;;  %1471 = vpow2.f32 %v1005_v0  ;;  %v881_v11 = vsel %vm785_vm13, %v1927_v53, %v854_v27  ;;  %v908_v60 = vmax.f32 %v1886_v29, 0.0  ;;  %vm795_vm9 = vcmp.gt.f32.partialorder %v1965_v24, 20.0 }
 0x3d8   :  { %v1109_v14 = vadd.f32 -1.0, %v1452_v25  ;;  %v978_v15 = vmin.f32 %v2044_v43, 0.0  ;;  %v929_v23 = vmul.f32 %v913_v38, %v881_v11  ;;  %v1454_v49 = vpop.eup %1453  ;;  %v888_v46 = vsel %vm792_vm14, %v1929_v54, %v868_v18 }
 0x3d9   :  { %v1456_v62 = vpop.eup %1455  ;;  %v1103_v31 = vadd.f32 -1.0, %v1454_v49  ;;  %v936_v45 = vmul.f32 %v920_v12, %v888_v46  ;;  %vm962_vm10 = vcmp.gt.f32.partialorder %v2044_v43, 0.0 }
 0x3da   :  { %v1043_v53 = vsel %vm963_vm15, %v1984_v22, %v1109_v14  ;;  %v999_v37 = vmul.f32 1.442695, %v978_v15  ;;  %v2056_v40 = vadd.f32 %v929_v23, %v897_v39  ;;  %v1458_v5 = vpop.eup %1457  ;;  %v866_v63 = vmul.f32 0.6931472, %v1456_v62 }
 0x3db   :  { %1059 = vst [vmem:[#allocation2 + $0x30] sm:$0xff] %v1043_v53  ;;  %v1460_v54 = vpop.eup %1459  ;;  %v1037_v38 = vsel %vm957_vm2, %v1994_v4, %v1103_v31  ;;  %v2067_v44 = vadd.f32 %v936_v45, %v904_v10  ;;  %v872_v36 = vmul.f32 0.6931472, %v1458_v5 }
 0x3dc   :  { %1473 = vpow2.f32 %v999_v37  ;;  %v977_v22 = vmin.f32 %v2056_v40, 0.0  ;;  %v1462_v39 = vpop.eup %1461  ;;  %1053 = vst [vmem:[#allocation2] sm:$0xff] %v1037_v38  ;;  %v1106_v19 = vadd.f32 -1.0, %v1460_v54  ;;  %v887_v12 = vsel %vm791_vm0, %v1941_v7, %v866_v63 }
 0x3dd   :  { %v1464_v2 = vpop.eup %1463  ;;  %v935_v34 = vmul.f32 %v919_v35, %v887_v12  ;;  %v870_v48 = vmul.f32 0.6931472, %v1462_v39  ;;  %v984_v8 = vmin.f32 %v2067_v44, 0.0  ;;  %v890_v47 = vsel %vm794_vm1, %v1943_v6, %v872_v36 }
 0x3de   :  { %v997_v4 = vmul.f32 1.442695, %v977_v22  ;;  %v1040_v50 = vsel %vm960_vm5, %v2005_v61, %v1106_v19  ;;  %v938_v20 = vmul.f32 %v922_v9, %v890_v47  ;;  %v876_v28 = vmul.f32 0.6931472, %v1464_v2 }
 0x3df   :  { %1056 = vst [vmem:[#allocation2 + $0x18] sm:$0xff] %v1040_v50  ;;  %v2081_v7 = vadd.f32 %v935_v34, %v903_v33  ;;  %v889_v61 = vsel %vm793_vm3, %v1954_v41, %v870_v48  ;;  %v1011_v58 = vmul.f32 1.442695, %v984_v8  ;;  %vm961_vm11 = vcmp.gt.f32.partialorder %v2056_v40, 0.0 }
 0x3e0   :  { %v1466_v10 = vpop.eup %1465  ;;  %1475 = vpow2.f32 %v997_v4  ;;  %v937_v17 = vmul.f32 %v921_v16, %v889_v61  ;;  %v2092_v32 = vadd.f32 %v938_v20, %v906_v51  ;;  %v892_v0 = vsel %vm796_vm4, %v1956_v42, %v876_v28 }
 0x3e1   :  { %v1468_v56 = vpop.eup %1467  ;;  %v1105_v57 = vadd.f32 -1.0, %v1466_v10  ;;  %v983_v35 = vmin.f32 %v2081_v7, 0.0  ;;  %1477 = vpow2.f32 %v1011_v58  ;;  %v940_v52 = vmul.f32 %v924_v30, %v892_v0 }
 0x3e2   :  { %v1112_v6 = vadd.f32 -1.0, %v1468_v56  ;;  %v1470_v33 = vpop.eup %1469  ;;  %v2099_v41 = vadd.f32 %v937_v17, %v905_v55  ;;  %v986_v26 = vmin.f32 %v2092_v32, 0.0  ;;  %v923_v55 = vmin.f32 %v1896_v1, 0.0 }
 0x3e3   :  { %v1039_v9 = vsel %vm959_vm6, %v2017_v21, %v1105_v57  ;;  %v1009_v51 = vmul.f32 1.442695, %v983_v35  ;;  %v874_v11 = vmul.f32 0.6931472, %v1470_v33  ;;  %v956_v16 = vadd.f32 %v940_v52, %v908_v60 }
 0x3e4   :  { %v1472_v27 = vpop.eup %1471  ;;  %1055 = vst [vmem:[#allocation2 + $0x10] sm:$0xff] %v1039_v9  ;;  %v1046_v59 = vsel %vm966_vm7, %v2021_v13, %v1112_v6  ;;  %v985_v25 = vmin.f32 %v2099_v41, 0.0  ;;  %v1015_v42 = vmul.f32 1.442695, %v986_v26  ;;  %v907_v30 = vmax.f32 %v1896_v1, 0.0 }
 0x3e5   :  { %1062 = vst [vmem:[#allocation2 + $0x48] sm:$0xff] %v1046_v59  ;;  %v1111_v21 = vadd.f32 -1.0, %v1472_v27  ;;  %1479 = vpow2.f32 %v1009_v51  ;;  %v891_v14 = vsel %vm795_vm9, %v1965_v24, %v874_v11  ;;  %v988_v29 = vmin.f32 %v956_v16, 0.0 }
 0x3e6   :  { %v1013_v18 = vmul.f32 1.442695, %v985_v25  ;;  %1481 = vpow2.f32 %v1015_v42  ;;  %v939_v23 = vmul.f32 %v923_v55, %v891_v14  ;;  %vm968_vm12 = vcmp.gt.f32.partialorder %v2067_v44, 0.0 }
 0x3e7   :  { %v1045_v13 = vsel %vm965_vm8, %v2029_v3, %v1111_v21  ;;  %v1019_v46 = vmul.f32 1.442695, %v988_v29  ;;  %vm967_vm13 = vcmp.gt.f32.partialorder %v2081_v7, 0.0  ;;  %vm970_vm14 = vcmp.gt.f32.partialorder %v2092_v32, 0.0 }
 0x3e8   :  { %1061 = vst [vmem:[#allocation2 + $0x40] sm:$0xff] %v1045_v13  ;;  %1483 = vpow2.f32 %v1013_v18  ;;  %v955_v62 = vadd.f32 %v939_v23, %v907_v30  ;;  %vm969_vm15 = vcmp.gt.f32.partialorder %v2099_v41, 0.0  ;;  %vm972_vm0 = vcmp.gt.f32.partialorder %v956_v16, 0.0 }
 0x3e9   :  { %v1474_v15 = vpop.eup %1473  ;;  %1485 = vpow2.f32 %v1019_v46 }
 0x3ea   :  { %v1108_v49 = vadd.f32 -1.0, %v1474_v15  ;;  %v987_v31 = vmin.f32 %v955_v62, 0.0  ;;  %vm971_vm1 = vcmp.gt.f32.partialorder %v955_v62, 0.0 }
 0x3ec   :  { %v1042_v3 = vsel %vm962_vm10, %v2044_v43, %v1108_v49  ;;  %v1017_v24 = vmul.f32 1.442695, %v987_v31 }
 0x3ed   :  { %v1476_v53 = vpop.eup %1475  ;;  %1058 = vst [vmem:[#allocation2 + $0x28] sm:$0xff] %v1042_v3 }
 0x3ee   :  { %v1107_v37 = vadd.f32 -1.0, %v1476_v53  ;;  %v1478_v5 = vpop.eup %1477  ;;  %1487 = vpow2.f32 %v1017_v24 }
 0x3ef   :  { %v1114_v1 = vadd.f32 -1.0, %v1478_v5 }
 0x3f0   :  { %v1041_v45 = vsel %vm961_vm11, %v2056_v40, %v1107_v37 }
 0x3f1   :  { %1057 = vst [vmem:[#allocation2 + $0x20] sm:$0xff] %v1041_v45  ;;  %v1048_v54 = vsel %vm968_vm12, %v2067_v44, %v1114_v1 }
 0x3f2   :  { %v1480_v63 = vpop.eup %1479  ;;  %1064 = vst [vmem:[#allocation2 + $0x58] sm:$0xff] %v1048_v54 }
 0x3f3   :  { %v1113_v43 = vadd.f32 -1.0, %v1480_v63  ;;  %v1482_v38 = vpop.eup %1481 }
 0x3f4   :  { %v1116_v19 = vadd.f32 -1.0, %v1482_v38 }
 0x3f5   :  { %v1484_v22 = vpop.eup %1483  ;;  %v1047_v39 = vsel %vm967_vm13, %v2081_v7, %v1113_v43 }
 0x3f6   :  { %1063 = vst [vmem:[#allocation2 + $0x50] sm:$0xff] %v1047_v39  ;;  %v1115_v40 = vadd.f32 -1.0, %v1484_v22  ;;  %v1050_v12 = vsel %vm970_vm14, %v2092_v32, %v1116_v19  ;;  %v1486_v36 = vpop.eup %1485 }
 0x3f7   :  { %1066 = vst [vmem:[#allocation2 + $0x68] sm:$0xff] %v1050_v12  ;;  %v1118_v2 = vadd.f32 -1.0, %v1486_v36 }
 0x3f8   :  { %v1049_v44 = vsel %vm969_vm15, %v2099_v41, %v1115_v40 }
 0x3f9   :  { %1065 = vst [vmem:[#allocation2 + $0x60] sm:$0xff] %v1049_v44  ;;  %v1052_v4 = vsel %vm972_vm0, %v956_v16, %v1118_v2 }
 0x3fa   :  { %1068 = vst [vmem:[#allocation2 + $0x78] sm:$0xff] %v1052_v4 }
 0x3fb   :  { %v1488_v34 = vpop.eup %1487 }
 0x3fc   :  { %v1117_v48 = vadd.f32 -1.0, %v1488_v34 }
 0x3fe   :  { %v1051_v50 = vsel %vm971_vm1, %v955_v62, %v1117_v48 }
 0x3ff   :  { %1067 = vst [vmem:[#allocation2 + $0x70] sm:$0xff] %v1051_v50 }
 0x400   :  { %1500 = shalt.err (!%p1497_p4)
}
 0x401   :  { %s1513_s13 = smov 128   ;;  %s1514_s14 = smov 8  }
 0x402   :  { %1080 = dma.vmem_to_hbm [thread:$0]  %s1075_s11, 2048, %s2136_s5, [#allocation3], %s1513_s13, %s1513_s13, %s1514_s14  }
 0x403   :  { %1509 = dma.done.wait [#allocation3], 2048  }
 0x404   :  { %1510 = vsyncadd [#allocation3], 4294965248 }
 0x405   :  { %1084 = vsyncpa [#allocation3], 1 }

</bundles_post_ra>
